<compile_context>
chip_gen: v6e
topology: v6e:2x2x1
jax: 0.10.0
libtpu: 0.0.40
codegen_flags: <defaults>
</compile_context>

<pallas_src>
import functools

import jax
import jax.numpy as jnp
from jax.experimental import pallas as pl
from jax.experimental.pallas import tpu as pltpu

LANE = 128
NODE_PAD = 256          # node-count padding granularity (decoupled from TK)
TM_CAP = 1024
TK_CAP = 4096
VMEM_LIMIT = 48 * 1024 * 1024   # fits v7x's 64 MiB per-core VMEM with headroom


def _round_up(x, m):
    return ((x + m - 1) // m) * m


def _pad2d(a, rows, cols):
    """Zero-pad a 2-D array up to (rows, cols)."""
    return jnp.zeros((rows, cols), a.dtype).at[: a.shape[0], : a.shape[1]].set(a)


def _choose_tiles(n_p, tm_cap=TM_CAP, tk_cap=TK_CAP):
    """Largest multiples of 128 that divide n_p, under the caps.

    TM is additionally capped at n_p//2 (when possible) so the 'parallel' row
    axis has >=2 tiles and both v7x TensorCores get work.
    """
    def largest_div(cap):
        cap = max(128, min(cap, n_p))
        cap = (cap // 128) * 128
        for t in range(cap, 0, -128):
            if n_p % t == 0:
                return t
        return 128

    tk = largest_div(tk_cap)
    tm_cap_eff = tm_cap if n_p < 2 * 128 else min(tm_cap, n_p // 2)
    tm = largest_div(tm_cap_eff)
    return tm, tk


# ----------------------------------------------------------------------------
# Kernel: one SAGEConv layer, tiled over (node rows, node cols).
# ----------------------------------------------------------------------------
def sage_layer_kernel(a_ref, xs_ref, xd_ref, inv_ref, w_ref, b_ref, o_ref,
                      acc_ref, *, apply_relu):
    """One grid step of: out = (sum_agg * 1/deg) @ W_l + x_self @ W_r + b.

    a_ref  : (TM, TK)          int8   edge-count adjacency tile (dst, src)
    xs_ref : (TK, C)           bf16   source-node feature rows (streamed over K)
    xd_ref : (TM, C)           bf16   destination-node feature rows (self term)
    inv_ref: (TM, 1)           f32    per-row 1/in_degree
    w_ref  : (2, C, Cout)      bf16   stacked [W_l, W_r]
    b_ref  : (1, Cout)         f32    bias (lin_l only)
    o_ref  : (TM, Cout)        out dtype (bf16 layer 1 / f32 layer 2)
    acc_ref: (TM, C)           f32    VMEM scratch for the neighbor-sum
    """
    k = pl.program_id(1)

    @pl.when(k == 0)
    def _():
        acc_ref[...] = jnp.zeros_like(acc_ref)

    # Upcast the int8 counts to bf16 (VPU; exact for small integer counts) and
    # accumulate the un-normalized neighbor sum in f32 on the MXU.
    a_tile = a_ref[...].astype(jnp.bfloat16)
    acc_ref[...] += jnp.dot(a_tile, xs_ref[...],
                            preferred_element_type=jnp.float32)

    @pl.when(k == pl.num_programs(1) - 1)
    def _():
        # Mean = sum * (1/deg), with the scale kept in f32.
        agg = (acc_ref[...] * inv_ref[...]).astype(jnp.bfloat16)
        # Two dots summed (no lane-axis concat copy).
        out = jnp.dot(agg, w_ref[0], preferred_element_type=jnp.float32)
        out += jnp.dot(xd_ref[...], w_ref[1],
                       preferred_element_type=jnp.float32)
        out += b_ref[...]
        if apply_relu:
            out = jnp.maximum(out, 0.0)
        o_ref[...] = out.astype(o_ref.dtype)


def _sage_layer(a_p, x_p, inv_p, w_stacked, b_p, *, tm, tk, apply_relu,
                out_dtype):
    """Run one tiled SAGEConv layer. All inputs already padded / cast."""
    n_p = a_p.shape[0]
    c_in_p = x_p.shape[1]
    c_out_p = w_stacked.shape[2]
    assert n_p % tm == 0 and n_p % tk == 0
    grid = (n_p // tm, n_p // tk)

    out_bytes = jnp.dtype(out_dtype).itemsize
    flops = 2 * n_p * n_p * c_in_p + 2 * 2 * n_p * c_in_p * c_out_p
    bytes_accessed = (a_p.size                      # int8 adjacency, read once
                      + (n_p // tm) * x_p.size * 2  # xs re-read per row tile
                      + x_p.size * 2                # xd (self)
                      + inv_p.size * 4
                      + w_stacked.size * 2 + b_p.size * 4
                      + n_p * c_out_p * out_bytes)

    return pl.pallas_call(
        functools.partial(sage_layer_kernel, apply_relu=apply_relu),
        out_shape=jax.ShapeDtypeStruct((n_p, c_out_p), out_dtype),
        grid_spec=pltpu.PrefetchScalarGridSpec(
            num_scalar_prefetch=0,
            grid=grid,
            in_specs=[
                pl.BlockSpec((tm, tk), lambda i, k: (i, k)),           # A (int8)
                pl.BlockSpec((tk, c_in_p), lambda i, k: (k, 0)),       # x (src)
                pl.BlockSpec((tm, c_in_p), lambda i, k: (i, 0)),       # x (self)
                pl.BlockSpec((tm, 1), lambda i, k: (i, 0)),            # 1/deg
                pl.BlockSpec((2, c_in_p, c_out_p), lambda i, k: (0, 0, 0)),  # W
                pl.BlockSpec((1, c_out_p), lambda i, k: (0, 0)),       # bias
            ],
            out_specs=pl.BlockSpec((tm, c_out_p), lambda i, k: (i, 0)),
            scratch_shapes=[pltpu.VMEM((tm, c_in_p), jnp.float32)],
        ),
        compiler_params=pltpu.CompilerParams(
            # Row axis sharded across TensorCores (v7x); K axis is the reduction.
            dimension_semantics=("parallel", "arbitrary"),
            vmem_limit_bytes=VMEM_LIMIT,
        ),
        cost_estimate=pl.CostEstimate(
            flops=flops, transcendentals=0, bytes_accessed=bytes_accessed),
    )(a_p, x_p, x_p, inv_p, w_stacked, b_p)


# ----------------------------------------------------------------------------
# Host-side wrappers.
# ----------------------------------------------------------------------------
def edge_index_to_count_adjacency(edge_index, num_nodes):
    """Dense edge-count adjacency (int8) + per-row f32 1/in_degree.

    A[dst, src] = number of (src->dst) edges (0/1 for simple graphs);
    inv_deg[dst] = 1 / max(in_degree(dst), 1).
    """
    src = edge_index[0]
    dst = edge_index[1]
    a = jnp.zeros((num_nodes, num_nodes), jnp.float32)
    a = a.at[dst, src].add(1.0)
    deg = jnp.sum(a, axis=1, keepdims=True)
    inv_deg = 1.0 / jnp.maximum(deg, 1.0)
    return a.astype(jnp.int8), inv_deg.astype(jnp.float32)


def graphsage_forward(x, edge_index, params, *, tm_cap=TM_CAP, tk_cap=TK_CAP):
    """Full 2-layer GraphSAGE forward using two tiled Pallas calls."""
    n, c_in = x.shape
    w1l, w1r, b1, w2l, w2r, b2 = params
    hidden = w1l.shape[1]
    c_out = w2l.shape[1]

    # Padded sizes: lane-dense features, small node-padding granularity.
    c_in_p = _round_up(c_in, LANE)
    h_p = _round_up(hidden, LANE)
    c_out_p = _round_up(c_out, LANE)
    n_p = _round_up(n, NODE_PAD)
    tm, tk = _choose_tiles(n_p, tm_cap, tk_cap)

    # int8 count adjacency + f32 row scale; bf16 features.
    a_cnt, inv_deg = edge_index_to_count_adjacency(edge_index, n)
    a_p = _pad2d(a_cnt, n_p, n_p)                          # int8
    inv_p = _pad2d(inv_deg, n_p, 1)                        # f32
    x_p = _pad2d(x, n_p, c_in_p).astype(jnp.bfloat16)

    # Stacked, zero-padded weights [W_l, W_r] (bf16) and padded biases (f32).
    w1 = jnp.stack([_pad2d(w1l, c_in_p, h_p),
                    _pad2d(w1r, c_in_p, h_p)], axis=0).astype(jnp.bfloat16)
    b1p = _pad2d(b1, 1, h_p).astype(jnp.float32)
    w2 = jnp.stack([_pad2d(w2l, h_p, c_out_p),
                    _pad2d(w2r, h_p, c_out_p)], axis=0).astype(jnp.bfloat16)
    b2p = _pad2d(b2, 1, c_out_p).astype(jnp.float32)

    # Layer 1 (+ ReLU) emits bf16 directly; layer 2 consumes it as-is.
    h = _sage_layer(a_p, x_p, inv_p, w1, b1p, tm=tm, tk=tk,
                    apply_relu=True, out_dtype=jnp.bfloat16)
    out = _sage_layer(a_p, h, inv_p, w2, b2p, tm=tm, tk=tk,
                      apply_relu=False, out_dtype=jnp.float32)
    return out[:n, :c_out]


def init_params(key, in_channels, hidden_channels, out_channels):
    """Deterministic synthetic parameters, stored as [in, out] (x @ W math)."""
    ks = jax.random.split(key, 6)
    s1 = 1.0 / jnp.sqrt(jnp.float32(in_channels))
    s2 = 1.0 / jnp.sqrt(jnp.float32(hidden_channels))
    w1l = jax.random.uniform(ks[0], (in_channels, hidden_channels), jnp.float32, -s1, s1)
    w1r = jax.random.uniform(ks[1], (in_channels, hidden_channels), jnp.float32, -s1, s1)
    b1 = jax.random.uniform(ks[2], (1, hidden_channels), jnp.float32, -s1, s1)
    w2l = jax.random.uniform(ks[3], (hidden_channels, out_channels), jnp.float32, -s2, s2)
    w2r = jax.random.uniform(ks[4], (hidden_channels, out_channels), jnp.float32, -s2, s2)
    b2 = jax.random.uniform(ks[5], (1, out_channels), jnp.float32, -s2, s2)
    return (w1l, w1r, b1, w2l, w2r, b2)


def reference_forward(x, edge_index, params):
    """Pure-JAX reference mirroring the kernel's bf16-input / f32-accum math."""
    w1l, w1r, b1, w2l, w2r, b2 = params
    a_cnt, inv_deg = edge_index_to_count_adjacency(edge_index, x.shape[0])
    bf = lambda t: t.astype(jnp.bfloat16)
    a_b = bf(a_cnt.astype(jnp.float32))   # exact small-integer counts

    def layer(x_b, wl, wr, b, relu):
        agg = jnp.dot(a_b, x_b, preferred_element_type=jnp.float32) * inv_deg
        out = (jnp.dot(bf(agg), bf(wl), preferred_element_type=jnp.float32)
               + jnp.dot(x_b, bf(wr), preferred_element_type=jnp.float32) + b)
        return jnp.maximum(out, 0.0) if relu else out

    h = layer(bf(x), w1l, w1r, b1, True)
    return layer(bf(h), w2l, w2r, b2, False)


if __name__ == "__main__":
    # Small deterministic problem: 200 nodes (padded to 256 -> grid (2, 1) with
    # tm=128, tk=256), 8 in-channels, 32 hidden, 16 out (all padded to 128 lanes).
    num_nodes = 200
    in_channels = 8
    hidden_channels = 32
    out_channels = 16

    key = jax.random.PRNGKey(0)
    k_x, k_p = jax.random.split(key)

    x = jax.random.normal(k_x, (num_nodes, in_channels), jnp.float32)

    # Bidirectional ring plus a few chords (COO edge_index, shape [2, E]).
    ring_src = jnp.arange(num_nodes, dtype=jnp.int32)
    ring_dst = (ring_src + 1) % num_nodes
    chord_src = jnp.arange(0, num_nodes, 4, dtype=jnp.int32)
    chord_dst = (chord_src + num_nodes // 2) % num_nodes
    src = jnp.concatenate([ring_src, ring_dst, chord_src])
    dst = jnp.concatenate([ring_dst, ring_src, chord_dst])
    edge_index = jnp.stack([src, dst], axis=0)

    params = init_params(k_p, in_channels, hidden_channels, out_channels)

    out = graphsage_forward(x, edge_index, params)
    out = jax.block_until_ready(out)

    ref = reference_forward(x, edge_index, params)
    assert out.shape == (num_nodes, out_channels)
    assert jnp.allclose(out, ref, atol=1e-2, rtol=1e-2), "mismatch vs reference"

    print("KERNEL_OK")
</pallas_src>

<mosaic_0001>
module attributes {stable_mosaic.version = 11 : i64} {
  func.func @sage_layer_kernel(%arg0: i32, %arg1: i32, %arg2: memref<128x256xi8, #tpu.memory_space<vmem>>, %arg3: memref<256x128xbf16, #tpu.memory_space<vmem>>, %arg4: memref<128x128xbf16, #tpu.memory_space<vmem>>, %arg5: memref<128x1xf32, #tpu.memory_space<vmem>>, %arg6: memref<2x128x128xbf16, #tpu.memory_space<vmem>>, %arg7: memref<1x128xf32, #tpu.memory_space<vmem>>, %arg8: memref<128x128xbf16, #tpu.memory_space<vmem>>, %arg9: memref<128x128xf32, #tpu.memory_space<vmem>>) attributes {dimension_semantics = [#tpu.dimension_semantics<parallel>, #tpu.dimension_semantics<arbitrary>], iteration_bounds = array<i64: 2, 1>, scalar_prefetch = 0 : i64, scratch_operands = 1 : i64, tpu.core_type = #tpu.core_type<tc>, window_params = [{transform_indices = @transform_0, window_bounds = array<i64: 128, 256>}, {transform_indices = @transform_1, window_bounds = array<i64: 256, 128>}, {transform_indices = @transform_2, window_bounds = array<i64: 128, 128>}, {transform_indices = @transform_3, window_bounds = array<i64: 128, 1>}, {pipeline_mode = #tpu.pipeline_mode<synchronous>, transform_indices = @transform_4, window_bounds = array<i64: 2, 128, 128>}, {pipeline_mode = #tpu.pipeline_mode<synchronous>, transform_indices = @transform_5, window_bounds = array<i64: 1, 128>}, {transform_indices = @transform_6, window_bounds = array<i64: 128, 128>}]} {
    %c0_i32 = arith.constant 0 : i32
    %0 = arith.cmpi eq, %arg1, %c0_i32 : i32
    %1 = arith.extui %0 : i1 to i32
    %c0_i32_0 = arith.constant 0 : i32
    %2 = arith.cmpi ne, %1, %c0_i32_0 : i32
    scf.if %2 {
      %cst_10 = arith.constant 0.000000e+00 : f32
      %13 = vector.broadcast %cst_10 : f32 to vector<128x128xf32>
      %c0_11 = arith.constant 0 : index
      %c0_12 = arith.constant 0 : index
      %14 = vector.load %arg9[%c0_11, %c0_12] : memref<128x128xf32, #tpu.memory_space<vmem>>, vector<128x128xf32>
      tpu.vector_store %arg9[%c0_11, %c0_12], %13 {strides = array<i32>} : memref<128x128xf32, #tpu.memory_space<vmem>>, vector<128x128xf32>,
    } else {
    }
    %c0 = arith.constant 0 : index
    %c0_1 = arith.constant 0 : index
    %3 = vector.load %arg2[%c0, %c0_1] : memref<128x256xi8, #tpu.memory_space<vmem>>, vector<128x256xi8>
    %4 = arith.sitofp %3 : vector<128x256xi8> to vector<128x256xbf16>
    %c0_2 = arith.constant 0 : index
    %c0_3 = arith.constant 0 : index
    %5 = vector.load %arg9[%c0_2, %c0_3] : memref<128x128xf32, #tpu.memory_space<vmem>>, vector<128x128xf32>
    %c0_4 = arith.constant 0 : index
    %c0_5 = arith.constant 0 : index
    %6 = vector.load %arg3[%c0_4, %c0_5] : memref<256x128xbf16, #tpu.memory_space<vmem>>, vector<256x128xbf16>
    %cst = arith.constant dense<0.000000e+00> : vector<128x128xf32>
    %7 = tpu.matmul %4, %6, %cst {dimension_numbers = #tpu.dot_dimension_numbers<[1], [0], [0], [1], [0, 0, 1, 1], [], []>} : vector<128x256xbf16>, vector<256x128xbf16>, vector<128x128xf32> -> vector<128x128xf32>
    %8 = arith.addf %5, %7 : vector<128x128xf32>
    %c0_6 = arith.constant 0 : index
    %c0_7 = arith.constant 0 : index
    %9 = vector.load %arg9[%c0_6, %c0_7] : memref<128x128xf32, #tpu.memory_space<vmem>>, vector<128x128xf32>
    tpu.vector_store %arg9[%c0_6, %c0_7], %8 {strides = array<i32>} : memref<128x128xf32, #tpu.memory_space<vmem>>, vector<128x128xf32>,
    %c0_i32_8 = arith.constant 0 : i32
    %10 = arith.cmpi eq, %arg1, %c0_i32_8 : i32
    %11 = arith.extui %10 : i1 to i32
    %c0_i32_9 = arith.constant 0 : i32
    %12 = arith.cmpi ne, %11, %c0_i32_9 : i32
    scf.if %12 {
      %c0_10 = arith.constant 0 : index
      %c0_11 = arith.constant 0 : index
      %13 = vector.load %arg9[%c0_10, %c0_11] : memref<128x128xf32, #tpu.memory_space<vmem>>, vector<128x128xf32>
      %c0_12 = arith.constant 0 : index
      %c0_13 = arith.constant 0 : index
      %14 = vector.load %arg5[%c0_12, %c0_13] : memref<128x1xf32, #tpu.memory_space<vmem>>, vector<128x1xf32>
      %15 = vector.broadcast %14 : vector<128x1xf32> to vector<128x128xf32>
      %16 = arith.mulf %13, %15 : vector<128x128xf32>
      %17 = arith.truncf %16 : vector<128x128xf32> to vector<128x128xbf16>
      %c0_14 = arith.constant 0 : index
      %c0_15 = arith.constant 0 : index
      %c0_16 = arith.constant 0 : index
      %18 = vector.load %arg6[%c0_14, %c0_15, %c0_16] : memref<2x128x128xbf16, #tpu.memory_space<vmem>>, vector<1x128x128xbf16>
      %19 = vector.shape_cast %18 : vector<1x128x128xbf16> to vector<128x128xbf16>
      %cst_17 = arith.constant dense<0.000000e+00> : vector<128x128xf32>
      %20 = tpu.matmul %17, %19, %cst_17 {dimension_numbers = #tpu.dot_dimension_numbers<[1], [0], [0], [1], [0, 0, 1, 1], [], []>} : vector<128x128xbf16>, vector<128x128xbf16>, vector<128x128xf32> -> vector<128x128xf32>
      %c0_18 = arith.constant 0 : index
      %c0_19 = arith.constant 0 : index
      %21 = vector.load %arg4[%c0_18, %c0_19] : memref<128x128xbf16, #tpu.memory_space<vmem>>, vector<128x128xbf16>
      %c1 = arith.constant 1 : index
      %c0_20 = arith.constant 0 : index
      %c0_21 = arith.constant 0 : index
      %22 = vector.load %arg6[%c1, %c0_20, %c0_21] : memref<2x128x128xbf16, #tpu.memory_space<vmem>>, vector<1x128x128xbf16>
      %23 = vector.shape_cast %22 : vector<1x128x128xbf16> to vector<128x128xbf16>
      %cst_22 = arith.constant dense<0.000000e+00> : vector<128x128xf32>
      %24 = tpu.matmul %21, %23, %cst_22 {dimension_numbers = #tpu.dot_dimension_numbers<[1], [0], [0], [1], [0, 0, 1, 1], [], []>} : vector<128x128xbf16>, vector<128x128xbf16>, vector<128x128xf32> -> vector<128x128xf32>
      %25 = arith.addf %20, %24 : vector<128x128xf32>
      %c0_23 = arith.constant 0 : index
      %c0_24 = arith.constant 0 : index
      %26 = vector.load %arg7[%c0_23, %c0_24] : memref<1x128xf32, #tpu.memory_space<vmem>>, vector<1x128xf32>
      %27 = vector.broadcast %26 : vector<1x128xf32> to vector<128x128xf32>
      %28 = arith.addf %25, %27 : vector<128x128xf32>
      %cst_25 = arith.constant 0.000000e+00 : f32
      %29 = vector.broadcast %cst_25 : f32 to vector<128x128xf32>
      %30 = arith.maximumf %28, %29 : vector<128x128xf32>
      %31 = arith.truncf %30 : vector<128x128xf32> to vector<128x128xbf16>
      %c0_26 = arith.constant 0 : index
      %c0_27 = arith.constant 0 : index
      %32 = vector.load %arg8[%c0_26, %c0_27] : memref<128x128xbf16, #tpu.memory_space<vmem>>, vector<128x128xbf16>
      tpu.vector_store %arg8[%c0_26, %c0_27], %31 {strides = array<i32>} : memref<128x128xbf16, #tpu.memory_space<vmem>>, vector<128x128xbf16>,
    } else {
    }
    return
  }
  func.func @transform_0(%arg0: i32, %arg1: i32) -> (i32, i32) {
    %c0_i32 = arith.constant 0 : i32
    return %arg0, %arg1 : i32, i32
  }
  func.func @transform_1(%arg0: i32, %arg1: i32) -> (i32, i32) {
    %c0_i32 = arith.constant 0 : i32
    %c0_i32_0 = arith.constant 0 : i32
    return %arg1, %c0_i32 : i32, i32
  }
  func.func @transform_2(%arg0: i32, %arg1: i32) -> (i32, i32) {
    %c0_i32 = arith.constant 0 : i32
    %c0_i32_0 = arith.constant 0 : i32
    return %arg0, %c0_i32 : i32, i32
  }
  func.func @transform_3(%arg0: i32, %arg1: i32) -> (i32, i32) {
    %c0_i32 = arith.constant 0 : i32
    %c0_i32_0 = arith.constant 0 : i32
    return %arg0, %c0_i32 : i32, i32
  }
  func.func @transform_4(%arg0: i32, %arg1: i32) -> (i32, i32, i32) {
    %c0_i32 = arith.constant 0 : i32
    %c0_i32_0 = arith.constant 0 : i32
    %c0_i32_1 = arith.constant 0 : i32
    %c0_i32_2 = arith.constant 0 : i32
    return %c0_i32, %c0_i32_0, %c0_i32_1 : i32, i32, i32
  }
  func.func @transform_5(%arg0: i32, %arg1: i32) -> (i32, i32) {
    %c0_i32 = arith.constant 0 : i32
    %c0_i32_0 = arith.constant 0 : i32
    %c0_i32_1 = arith.constant 0 : i32
    return %c0_i32, %c0_i32_0 : i32, i32
  }
  func.func @transform_6(%arg0: i32, %arg1: i32) -> (i32, i32) {
    %c0_i32 = arith.constant 0 : i32
    %c0_i32_0 = arith.constant 0 : i32
    return %arg0, %c0_i32 : i32, i32
  }
}

</mosaic_0001>

<bundles_post_ra>
// kernel: tpu_custom_call.1
= control target key start
LH: loop header
LB: loop body
LE: loop exit
PB: predicated region body
PF: predicated region fallthrough
CT: control target
= control target key end

     0   :  { %s2435_s0 = inlined_call_operand.vmem [shape: s8[256,256], index: 0, kind: input, shape index: {}]   ;;  %s2436_s1 = inlined_call_operand.vmem [shape: bf16[256,128], index: 1, kind: input, shape index: {}]   ;;  %s2437_s2 = inlined_call_operand.hbm [shape: bf16[256,128], index: 2, kind: input, shape index: {}]   ;;  %s2438_s3 = inlined_call_operand.vmem [shape: f32[256,1], index: 3, kind: input, shape index: {}]   ;;  %s2439_s4 = inlined_call_operand.hbm [shape: bf16[2,128,128], index: 4, kind: input, shape index: {}]   ;;  %s2440_s5 = inlined_call_operand.vmem [shape: f32[1,128], index: 5, kind: input, shape index: {}]   ;;  %s2441_s6 = inlined_call_operand.hbm [shape: bf16[256,128], index: 6, kind: output, shape index: {}]  }
   0x1   :  { %2447 = sst [smem:[#allocation14_spill]] %s2439_s4 }
   0x2   :  { %11 = vsyncpa [#allocation4], 0 }
   0x3   :  { %13 = vsyncpa [#allocation4 + $0x1], 0 }
   0x4   :  { %14 = vsyncpa [#allocation7], 0 }
   0x5   :  { %15 = vsyncpa [#allocation5], 0 }
   0x6   :  { %17 = vsyncpa [#allocation5 + $0x1], 0  ;;  %s2106_s21 = smov 0   ;;  %s2108_s22 = smov 0  }
   0x7   :  { %s2110_s23 = smov 0   ;;  %s2112_s24 = smov 0  }
   0x8   :  { %s2114_s25 = smov 0   ;;  %s2116_s26 = smov 0  }
   0x9 LB: > { %2448 = sst [smem:[#allocation12_spill]] %s2057_s25  ;;  %s1497_s27 = sadd.s32 4294967295, %s2061_s26   ;;  %s2061_s26 = sphi %s2116_s26, %s23_s26   ;;  %s2057_s25 = sphi %s2114_s25, %s2466_s25   ;;  %s2053_s24 = sphi %s2112_s24, %s2465_s24   ;;  %s2049_s23 = sphi %s2110_s23, %s2469_s23   ;;  %s2045_s22 = sphi %s2108_s22, %s2468_s22   ;;  %s2041_s21 = sphi %s2106_s21, %s2467_s21  }
   0xa   : > { %s1498_s28 = sadd.s32 4294967294, %s2061_s26   ;;  %p109_p0 = scmp.ne.s32.totalorder %s2045_s22, %s2041_s21 }
   0xb   : > { %p2140_p1 = scmp.eq.s32.totalorder %s1497_s27, 0  ;;  %p2144_p2 = scmp.eq.s32.totalorder %s1497_s27, 1 }
   0xc   : > { %p207_p3 = scmp.eq.s32.totalorder %s1498_s28, 1  ;;  %p1499_p5 = scmp.ge.s32.totalorder %s2061_s26, 1 }
   0xd   : > { %p2150_p4 = por %p2140_p1, %p109_p0  ;;  %p214_p7 = scmp.lt.s32.totalorder %s2061_s26, 3 }
   0xe   : > { %p2155_p6 = por %p207_p3, %p109_p0  ;;  %s2063_s10 = smov [#allocation6]  }
   0xf   : > { %s2451_s7 = scalar_select %p2150_p4, 1, 0 }
  0x10   : > { %s2452_s8 = scalar_select %p2155_p6, 1, 0 }
  0x11   : > { %p2160_p8 = pnand %p1499_p5, %p214_p7  ;;  %s235_s11 = sshll.u32 %s2063_s10, 4  ;;  %s236_s11 = int_to_ptr.vmem [resolvable:$true] %s235_s11 }
  0x12   : > { %s35_s13 = sadd.s32 1, %s2057_s25  ;;  %s1934_s14 = scalar_lea.vmem %s236_s11, 2048 }
  0x13   : > { %p1811_p9 = pneg %p2160_p8  ;;  %p1935_p13 = scmp.ne.s32.totalorder %s236_s11, %s1934_s14 }
  0x14   : > { %p1942_p5 = scmp.lt.s32.totalorder %s236_s11, %s236_s11  ;;  %p1943_p7 = scmp.lt.s32.totalorder %s1934_s14, %s1934_s14 }
  0x15   : > { %p2169_p11 = pnand %p1811_p9, %p2140_p1 }
  0x16   : > { %p1944_p6 = por %p1943_p7, %p1942_p5 }
  0x17   : > { %p1925_p12 = pneg %p2169_p11 }
  0x19   : > { %p1937_p0 = pnand %p1935_p13, %p1925_p12 }
  0x1b   : > { %p1938_p3 = pneg %p1937_p0 }
  0x1d   : > { %p1945_p4 = pnand %p1944_p6, %p1938_p3 }
  0x1f   : > { %1948 = shalt.err (!%p1945_p4)
}
  0x20   : > { %s2443_s15 = smov 64   ;;  %s2444_s16 = smov 4  }
  0x21   : > { %s2455_s4 = sld [smem:[#allocation14_spill]]  ;;  %p37_p4 = scmp.ge.s32.totalorder %s35_s13, 2 }
  0x22   : > { %s96_s19 = sadd.s32 1, %s2049_s23  ;;  %p103_p6 = scmp.ne.s32.totalorder %s2049_s23, %s2045_s22 }
  0x23   : > { %p104_p9 = scmp.eq.s32.totalorder %s2061_s26, 0  ;;  %s2471_s13 = smov (%p37_p4, %s35_s13), 0 }
  0x24   : > { %2456 = sst [smem:[#allocation13_spill]] %s2471_s13  ;;  %p2196_p13 = por %p2144_p2, %p103_p6 }
  0x25   : > { %p2190_p12 = por %p104_p9, %p103_p6  ;;  %s93_s28 = ssub.s32 %s2057_s25, %s2471_s13 }
  0x26   : > { %p1824_p0 = scmp.lt.s32.totalorder %s2061_s26, 2  ;;  %s267_s10 = sand.u32 1, %s2049_s23  }
  0x27   : > { %1814 = dma.hbm_to_vmem [thread:$0]  (!%p2169_p11), %s2455_s4, 2048, %s236_s11, [#allocation7], %s2443_s15, %s2443_s15, %s2444_s16  }
  0x28   : > { %p94_p11 = scmp.eq.s32.totalorder %s93_s28, 0  ;;  %s1503_s11 = sshll.u32 %s267_s10, 6 }
  0x29   : > { %s1577_s14 = sshll.u32 %s2057_s25, 10  ;;  %s271_s16 = scalar_lea.vmem [#allocation3], %s1503_s11 }
  0x2a   : > { %s2205_s12 = scalar_select %p94_p11, %s2049_s23, %s96_s19  }
  0x2b   : > { %s277_s15 = scalar_lea.hbm %s2437_s2, %s1577_s14  ;;  %s278_s4 = sshll.u32 %s271_s16, 4  ;;  %s279_s4 = int_to_ptr.vmem [resolvable:$true] %s278_s4 }
  0x2c   : > { %p2213_p2 = pnand %p1824_p0, %p2190_p12  ;;  %s268_s13 = scalar_lea.sflag [#allocation4], %s267_s10 }
  0x2d   : > { %s1962_s28 = scalar_lea.vmem %s279_s4, 1024  ;;  %s2066_s19 = smov [#allocation3]  }
  0x2e   : > { %p1951_p3 = pneg %p2213_p2  ;;  %p1963_p5 = scmp.ne.s32.totalorder %s279_s4, %s1962_s28 }
  0x2f   : > { %s1967_s25 = sshll.u32 %s2066_s19, 4  ;;  %s1968_s25 = int_to_ptr.vmem [resolvable:$false] %s1967_s25 }
  0x30   : > { %p1965_p7 = pnand %p1963_p5, %p1951_p3  ;;  %s1969_s14 = scalar_lea.vmem %s1968_s25, 2048 }
  0x31   : > { %p1970_p6 = scmp.lt.s32.totalorder %s279_s4, %s1968_s25  ;;  %p1971_p9 = scmp.lt.s32.totalorder %s1969_s14, %s1962_s28 }
  0x32   : > { %p1966_p4 = pneg %p1965_p7 }
  0x33   : > { %p1972_p11 = por %p1971_p9, %p1970_p6 }
  0x35   : > { %p1973_p10 = pnand %p1972_p11, %p1966_p4 }
  0x37   : > { %1976 = shalt.err (!%p1973_p10)
}
  0x38   : > { %s2460_s16 = smov 4   ;;  %s2461_s20 = smov 64  }
  0x39   : > { %1818 = dma.hbm_to_vmem [thread:$0]  (!%p2213_p2), %s277_s15, 1024, %s279_s4, %s268_s13, %s2461_s20, %s2461_s20, %s2460_s16  }
  0x3a   : > { %299 = sbr.rel (%p2160_p8) target bundleno = 582 (0x246), region = 44  ;;  %s2227_s10 = sand.u32 (!%p2160_p8), 1, %s2045_s22  }
  0x3b   : > { %s1507_s25 = sshll.u32 (!%p2160_p8), %s2227_s10, 6  ;;  %s302_s11 = scalar_lea.sflag (!%p2160_p8), [#allocation4], %s2227_s10 }
  0x3c   : > { %s2233_s17 = scalar_lea.vmem (!%p2160_p8), [#allocation3], %s1507_s25  ;;  %p2462_p10 = scmp.ne.s32.totalorder (!%p2160_p8), %s2451_s7, 0 }
  0x3f   : > { %2028 = dma.done.wait (%p2462_p10), %s302_s11, 1024  }
  0x40   : > { %2030 = vsyncadd (%p2462_p10), %s302_s11, 4294966272 }
  0x41   : > { %2032 = dma.done.wait (%p2140_p1), [#allocation7], 2048  }
  0x42   : > { %2034 = vsyncadd (%p2140_p1), [#allocation7], 4294965248  ;;  %v2067_v0 = vmov 0   ;;  %s1510_s4 = sshll.u32 %s2053_s24, 2  ;;  %v1883_v1 = vld [vmem:[%s2436_s1 + $0x78] sm:$0xff]   ;;  %s1513_s7 = sshll.u32 %s2053_s24, 4 }
  0x43   : > { %1881 = vset.pattern.permute.xlu0 %v2067_v0  ;;  %1882 = vset.pattern.permute.xlu1 %v2067_v0  ;;  %v1884_v2 = vld [vmem:[%s2436_s1 + $0x38] sm:$0xff]   ;;  %v1885_v3 = vld [vmem:[%s2436_s1 + $0x70] sm:$0xff]   ;;  %p360_p1 = scmp.lt.s32.totalorder %s1510_s4, 7  ;;  %v1887_v5 = vld [vmem:[%s2436_s1 + $0x68] sm:$0xff]   ;;  %p378_p8 = scmp.lt.s32.totalorder %s1513_s7, 31 }
  0x44   : > { %1643 = vmatprep.subr.bf16.mxu0 %v1883_v1  ;;  %v1886_v4 = vld [vmem:[%s2436_s1 + $0x30] sm:$0xff]   ;;  %v1888_v6 = vld [vmem:[%s2436_s1 + $0x28] sm:$0xff]   ;;  %v1889_v7 = vld [vmem:[%s2436_s1 + $0x60] sm:$0xff]   ;;  %s1348_s29 = scalar_lea.sflag [#allocation5], %s2227_s10 }
  0x45   : > { %1644 = vmatpush3.bf16.msra.mxu0 %v1884_v2  ;;  %s2473_s4 = smov (!%p360_p1, %s1510_s4), 7  ;;  %s2475_s7 = smov (!%p378_p8, %s1513_s7), 31  ;;  %v1890_v8 = vld [vmem:[%s2436_s1 + $0x20] sm:$0xff]   ;;  %v1891_v9 = vld [vmem:[%s2436_s1 + $0x58] sm:$0xff]   ;;  %v1893_v11 = vld [vmem:[%s2436_s1 + $0x50] sm:$0xff]  }
  0x46   : > { %1645 = vmatprep.subr.bf16.mxu0 %v1885_v3  ;;  %s1578_s15 = sshll.u32 %s2473_s4, 4  ;;  %s1514_s19 = sshll.u32 %s2475_s7, 3  ;;  %v1892_v10 = vld [vmem:[%s2436_s1 + $0x18] sm:$0xff]   ;;  %v1894_v15 = vld [vmem:[%s2436_s1 + $0x10] sm:$0xff]   ;;  %v1895_v17 = vld [vmem:[%s2436_s1 + $0x48] sm:$0xff]  }
  0x47   : > { %s2275_s20 = scalar_lea.vmem %s2435_s0, %s1578_s15  ;;  %s2283_s18 = scalar_lea.vmem %s2438_s3, %s1514_s19  ;;  %v1896_v20 = vld [vmem:[%s2436_s1 + $0x8] sm:$0xff]   ;;  %v1897_v21 = vld [vmem:[%s2436_s1 + $0x40] sm:$0xff]   ;;  %v1899_v23 = vld [vmem:[#allocation6 + $0x78] sm:$0xff]  }
  0x48   : > { %v406_v12 = vld [vmem:[%s2275_s20 + $0x8] sm:$0xff]  ;;  %v721_v14 = vld [vmem:[%s2283_s18] sm:$0xff]  ;;  %v723_v16 = vld [vmem:[%s2283_s18 + $0x10] sm:$0xff]  ;;  %1739 = vmatprep.subr.bf16.mxu1 %v1899_v23 }
  0x49   : > { %1646 = vmatpush3.bf16.msra.mxu0 %v1886_v4  ;;  %v414_v13 = vunpack.c.l.s8.bf16 %v406_v12  ;;  %739 = vperm.xlu0 %1881, %v721_v14   ;;  %v722_v18 = vld [vmem:[%s2283_s18 + $0x8] sm:$0xff]  ;;  %v724_v19 = vld [vmem:[%s2283_s18 + $0x18] sm:$0xff]  ;;  %v725_v22 = vld [vmem:[%s2283_s18 + $0x20] sm:$0xff]  ;;  %v416_v32 = vunpack.c.h.s8.bf16 %v406_v12 }
  0x4a   : > { %1647 = vmatprep.subr.bf16.mxu0 %v1887_v5  ;;  %749 = vperm.xlu1 %1882, %v723_v16   ;;  %v1898_v24 = vld [vmem:[%s2436_s1] sm:$0xff]   ;;  %v1900_v25 = vld [vmem:[#allocation6 + $0x70] sm:$0xff]   ;;  %v726_v26 = vld [vmem:[%s2283_s18 + $0x28] sm:$0xff] }
  0x4b   : > { %605 = vmatprep.mubr.bf16.mxu0 %v414_v13  ;;  %v405_v27 = vld [vmem:[%s2275_s20] sm:$0xff]  ;;  %1740 = vmatpush3.bf16.msra.mxu1 %v1899_v23  ;;  %v1901_v28 = vld [vmem:[#allocation6 + $0x68] sm:$0xff]   ;;  %v727_v29 = vld [vmem:[%s2283_s18 + $0x30] sm:$0xff] }
  0x4c   : > { %1741 = vmatprep.subr.bf16.mxu1 %v1900_v25  ;;  %v413_v30 = vunpack.c.l.s8.bf16 %v405_v27  ;;  %v728_v31 = vld [vmem:[%s2283_s18 + $0x38] sm:$0xff]  ;;  %v1902_v33 = vld [vmem:[#allocation6 + $0x60] sm:$0xff]   ;;  %v730_v37 = vld [vmem:[%s2283_s18 + $0x48] sm:$0xff]  ;;  %v415_v41 = vunpack.c.h.s8.bf16 %v405_v27 }
  0x4d   : > { %1648 = vmatpush3.bf16.msra.mxu0 %v1888_v6  ;;  %744 = vperm.xlu0 %1881, %v722_v18   ;;  %v1907_v34 = vld [vmem:[%s2233_s17] sm:$0xff]   ;;  %v408_v36 = vld [vmem:[%s2275_s20 + $0x18] sm:$0xff]  ;;  %v731_v38 = vld [vmem:[%s2283_s18 + $0x50] sm:$0xff] }
  0x4e   : > { %1649 = vmatprep.subr.bf16.mxu0 %v1889_v7  ;;  %754 = vperm.xlu1 %1882, %v724_v19   ;;  %v729_v35 = vld [vmem:[%s2283_s18 + $0x40] sm:$0xff]  ;;  %v1903_v39 = vld [vmem:[#allocation6 + $0x58] sm:$0xff]   ;;  %v1904_v42 = vld [vmem:[#allocation6 + $0x50] sm:$0xff]   ;;  %v418_v43 = vunpack.c.l.s8.bf16 %v408_v36  ;;  %v420_v51 = vunpack.c.h.s8.bf16 %v408_v36 }
  0x4f   : > { %1742 = vmatpush3.bf16.msra.mxu1 %v1900_v25  ;;  %1755 = vmatprep.mubr.bf16.mxu1 %v1907_v34  ;;  %v732_v40 = vld [vmem:[%s2283_s18 + $0x58] sm:$0xff]  ;;  %v733_v44 = vld [vmem:[%s2283_s18 + $0x60] sm:$0xff]  ;;  %v734_v45 = vld [vmem:[%s2283_s18 + $0x68] sm:$0xff] }
  0x50   : > { %1743 = vmatprep.subr.bf16.mxu1 %v1901_v28  ;;  %v407_v46 = vld [vmem:[%s2275_s20 + $0x10] sm:$0xff]  ;;  %v1905_v47 = vld [vmem:[#allocation6 + $0x48] sm:$0xff]   ;;  %v736_v50 = vld [vmem:[%s2283_s18 + $0x78] sm:$0xff] }
  0x51   : > { %1650 = vmatpush3.bf16.msra.mxu0 %v1890_v8  ;;  %759 = vperm.xlu0 %1881, %v725_v22   ;;  %v735_v48 = vld [vmem:[%s2283_s18 + $0x70] sm:$0xff]  ;;  %v417_v49 = vunpack.c.l.s8.bf16 %v407_v46  ;;  %v1906_v52 = vld [vmem:[#allocation6 + $0x40] sm:$0xff]   ;;  %v410_v53 = vld [vmem:[%s2275_s20 + $0x28] sm:$0xff]  ;;  %v419_v55 = vunpack.c.h.s8.bf16 %v407_v46  ;;  %s2354_s18 = scalar_lea.vmem [#allocation8], %s1507_s25  ;;  %s1595_s25 = sshll.u32 %s2053_s24, 10 }
  0x52   : > { %1651 = vmatprep.subr.bf16.mxu0 %v1891_v9  ;;  %764 = vperm.xlu1 %1882, %v726_v26   ;;  %v1909_v54 = vld [vmem:[#allocation6 + $0x38] sm:$0xff]   ;;  %v1908_v56 = vld [vmem:[%s2233_s17 + $0x8] sm:$0xff]   ;;  %v422_v57 = vunpack.c.l.s8.bf16 %v410_v53  ;;  %v1910_v58 = vld [vmem:[#allocation6 + $0x30] sm:$0xff]   ;;  %v424_v0 = vunpack.c.h.s8.bf16 %v410_v53  ;;  %s1361_s7 = sshll.u32 %s2354_s18, 4  ;;  %s2383_s28 = scalar_lea.hbm %s2441_s6, %s1595_s25  ;;  %s2385_s7 = int_to_ptr.vmem [resolvable:$true] %s1361_s7 }
  0x53   : > { %1744 = vmatpush3.bf16.msra.mxu1 %v1901_v28  ;;  %v1911_v59 = vld [vmem:[%s2233_s17 + $0x10] sm:$0xff]   ;;  %v409_v60 = vld [vmem:[%s2275_s20 + $0x20] sm:$0xff]  ;;  %v1913_v61 = vld [vmem:[#allocation6 + $0x28] sm:$0xff]   ;;  %s1977_s19 = scalar_lea.vmem %s2385_s7, 1024  ;;  %s2068_s24 = smov [#allocation8]  }
  0x54   : > { %1745 = vmatprep.subr.bf16.mxu1 %v1902_v33  ;;  %v421_v62 = vunpack.c.l.s8.bf16 %v409_v60  ;;  %v1912_v63 = vld [vmem:[%s2233_s17 + $0x18] sm:$0xff]   ;;  %v423_v2 = vunpack.c.h.s8.bf16 %v409_v60  ;;  %v411_v4 = vld [vmem:[%s2275_s20 + $0x30] sm:$0xff]  ;;  %v1914_v8 = vld [vmem:[#allocation6 + $0x20] sm:$0xff]   ;;  %p1978_p12 = scmp.ne.s32.totalorder %s2385_s7, %s1977_s19  ;;  %s1981_s14 = sshll.u32 %s2068_s24, 4  ;;  %s1982_s14 = int_to_ptr.vmem [resolvable:$false] %s1981_s14 }
  0x55   : > { %1652 = vmatpush3.bf16.msra.mxu0 %v1892_v10  ;;  %769 = vperm.xlu0 %1881, %v727_v29   ;;  %v412_v1 = vld [vmem:[%s2275_s20 + $0x38] sm:$0xff]  ;;  %v425_v5 = vunpack.c.l.s8.bf16 %v411_v4  ;;  %v427_v7 = vunpack.c.h.s8.bf16 %v411_v4  ;;  %v1915_v9 = vld [vmem:[%s2233_s17 + $0x20] sm:$0xff]   ;;  %v1916_v10 = vld [vmem:[%s2233_s17 + $0x28] sm:$0xff]   ;;  %s1983_s16 = scalar_lea.vmem %s1982_s14, 2048  ;;  %p1984_p3 = scmp.lt.s32.totalorder %s2385_s7, %s1982_s14 }
  0x56   : > { %1653 = vmatprep.subr.bf16.mxu0 %v1893_v11  ;;  %774 = vperm.xlu1 %1882, %v728_v31   ;;  %v426_v3 = vunpack.c.l.s8.bf16 %v412_v1  ;;  %v428_v6 = vunpack.c.h.s8.bf16 %v412_v1  ;;  %v1917_v11 = vld [vmem:[#allocation6 + $0x18] sm:$0xff]   ;;  %v1918_v12 = vld [vmem:[#allocation6 + $0x10] sm:$0xff]   ;;  %v1922_v16 = vld [vmem:[#allocation6] sm:$0xff]   ;;  %p1979_p0 = pnand %p1978_p12, %p2196_p13  ;;  %p1985_p5 = scmp.lt.s32.totalorder %s1983_s16, %s1977_s19 }
  0x57   : > { %1746 = vmatpush3.bf16.msra.mxu1 %v1902_v33  ;;  %v1919_v13 = vld [vmem:[%s2233_s17 + $0x30] sm:$0xff]   ;;  %v1920_v14 = vld [vmem:[%s2233_s17 + $0x38] sm:$0xff]  }
  0x58   : > { %1747 = vmatprep.subr.bf16.mxu1 %v1903_v39  ;;  %p1980_p2 = pneg %p1979_p0  ;;  %p1986_p7 = por %p1985_p5, %p1984_p3 }
  0x59   : > { %1654 = vmatpush3.bf16.msra.mxu0 %v1894_v15  ;;  %779 = vperm.xlu0 %1881, %v729_v35   ;;  %v1921_v15 = vld [vmem:[#allocation6 + $0x8] sm:$0xff]  }
  0x5a   : > { %1655 = vmatprep.subr.bf16.mxu0 %v1895_v17  ;;  %784 = vperm.xlu1 %1882, %v730_v37   ;;  %p1987_p4 = pnand %p1986_p7, %p1980_p2 }
  0x5b   : > { %1748 = vmatpush3.bf16.msra.mxu1 %v1903_v39 }
  0x5c   : > { %1749 = vmatprep.subr.bf16.mxu1 %v1904_v42 }
  0x5d   : > { %1656 = vmatpush3.bf16.msra.mxu0 %v1896_v20  ;;  %789 = vperm.xlu0 %1881, %v731_v38  }
  0x5e   : > { %1657 = vmatprep.subr.bf16.mxu0 %v1897_v21  ;;  %794 = vperm.xlu1 %1882, %v732_v40  }
  0x5f   : > { %1750 = vmatpush3.bf16.msra.mxu1 %v1904_v42 }
  0x60   : > { %1751 = vmatprep.subr.bf16.mxu1 %v1905_v47 }
  0x61   : > { %1658 = vmatpush3.bf16.msra.mxu0 %v1898_v24  ;;  %799 = vperm.xlu0 %1881, %v733_v44  }
  0x62   : > { %804 = vperm.xlu1 %1882, %v734_v45  }
  0x63   : > { %1752 = vmatpush3.bf16.msra.mxu1 %v1905_v47 }
  0x64   : > { %606 = vmatmul.mubr.bf16.vlgmr.msra.gmra.mxu0 %v413_v30  ;;  %1753 = vmatprep.subr.bf16.mxu1 %v1906_v52 }
  0x65   : > { %613 = vmatprep.mubr.bf16.mxu0 %v416_v32  ;;  %809 = vperm.xlu0 %1881, %v735_v48  }
  0x66   : > { %814 = vperm.xlu1 %1882, %v736_v50  }
  0x67   : > { %1754 = vmatpush3.bf16.msra.mxu1 %v1906_v52 }
  0x68   : > { %1771 = vmatprep.subr.bf16.mxu1 %v1909_v54 }
  0x6a   : > { %1756 = vmatmul.mubr.bf16.vlgmr.msra.gmra.mxu1 %v1908_v56 }
  0x6b   : > { %1772 = vmatpush3.bf16.msra.mxu1 %v1909_v54  ;;  %1759 = vmatprep.mubr.bf16.mxu1 %v1911_v59 }
  0x6c   : > { %614 = vmatmul.mubr.bf16.gmra.mxu0 %v415_v41  ;;  %1773 = vmatprep.subr.bf16.mxu1 %v1910_v58 }
  0x6d   : > { %621 = vmatprep.mubr.bf16.mxu0 %v418_v43 }
  0x6f   : > { %1774 = vmatpush3.bf16.msra.mxu1 %v1910_v58 }
  0x70   : > { %1775 = vmatprep.subr.bf16.mxu1 %v1913_v61 }
  0x72   : > { %1760 = vmatmul.mubr.bf16.gmra.mxu1 %v1912_v63 }
  0x73   : > { %1776 = vmatpush3.bf16.msra.mxu1 %v1913_v61  ;;  %1763 = vmatprep.mubr.bf16.mxu1 %v1915_v9 }
  0x74   : > { %622 = vmatmul.mubr.bf16.gmra.mxu0 %v417_v49  ;;  %1777 = vmatprep.subr.bf16.mxu1 %v1914_v8 }
  0x75   : > { %629 = vmatprep.mubr.bf16.mxu0 %v420_v51 }
  0x77   : > { %1778 = vmatpush3.bf16.msra.mxu1 %v1914_v8 }
  0x78   : > { %1779 = vmatprep.subr.bf16.mxu1 %v1917_v11 }
  0x7a   : > { %1764 = vmatmul.mubr.bf16.gmra.mxu1 %v1916_v10 }
  0x7b   : > { %1780 = vmatpush3.bf16.msra.mxu1 %v1917_v11  ;;  %1767 = vmatprep.mubr.bf16.mxu1 %v1919_v13 }
  0x7c   : > { %630 = vmatmul.mubr.bf16.gmra.mxu0 %v419_v55  ;;  %1781 = vmatprep.subr.bf16.mxu1 %v1918_v12 }
  0x7d   : > { %637 = vmatprep.mubr.bf16.mxu0 %v422_v57 }
  0x7f   : > { %1782 = vmatpush3.bf16.msra.mxu1 %v1918_v12 }
  0x80   : > { %1783 = vmatprep.subr.bf16.mxu1 %v1921_v15 }
  0x82   : > { %1768 = vmatmul.mubr.bf16.gmra.mxu1 %v1920_v14 }
  0x83   : > { %1784 = vmatpush3.bf16.msra.mxu1 %v1921_v15 }
  0x84   : > { %638 = vmatmul.mubr.bf16.gmra.mxu0 %v421_v62  ;;  %1785 = vmatprep.subr.bf16.mxu1 %v1922_v16 }
  0x85   : > { %645 = vmatprep.mubr.bf16.mxu0 %v424_v0 }
  0x87   : > { %1786 = vmatpush3.bf16.msra.mxu1 %v1922_v16 }
  0x8c   : > { %646 = vmatmul.mubr.bf16.gmra.mxu0 %v423_v2 }
  0x8d   : > { %653 = vmatprep.mubr.bf16.mxu0 %v426_v3 }
  0x94   : > { %654 = vmatmul.mubr.bf16.gmra.mxu0 %v425_v5 }
  0x95   : > { %661 = vmatprep.mubr.bf16.mxu0 %v428_v6 }
  0x9c   : > { %662 = vmatmul.mubr.bf16.gmra.mxu0 %v427_v7 }
  0xc4   : > { %v740_v18 = vpop.permute.xlu0 %739 }
  0xc5   : > { %v750_v28 = vpop.permute.xlu1 %749 }
  0xc8   : > { %v745_v23 = vpop.permute.xlu0 %744 }
  0xc9   : > { %v755_v35 = vpop.permute.xlu1 %754 }
  0xcc   : > { %v760_v44 = vpop.permute.xlu0 %759 }
  0xcd   : > { %v765_v46 = vpop.permute.xlu1 %764 }
  0xd0   : > { %v770_v55 = vpop.permute.xlu0 %769 }
  0xd1   : > { %v775_v57 = vpop.permute.xlu1 %774 }
  0xd4   : > { %v780_v2 = vpop.permute.xlu0 %779 }
  0xd5   : > { %v785_v4 = vpop.permute.xlu1 %784 }
  0xd8   : > { %v790_v13 = vpop.permute.xlu0 %789 }
  0xd9   : > { %v795_v15 = vpop.permute.xlu1 %794 }
 0x124   : > { %v1659_v17 = vpop.f32.mrf.mxu0 }
 0x126   : > { %v1660_v19 = vpop.f32.mrf.mxu0 }
 0x127   : > { %v1661_v21 = vadd.f32 %v1660_v19, %v1659_v17 }
 0x128   : > { %v1662_v20 = vpop.f32.mrf.mxu0 }
 0x129   : > { %v817_v26 = vmul.f32 %v1661_v21, %v740_v18 }
 0x12a   : > { %v1663_v22 = vpop.f32.mrf.mxu0 }
 0x12b   : > { %v1664_v24 = vadd.f32 %v1663_v22, %v1662_v20 }
 0x12c   : > { %v1665_v25 = vpop.f32.mrf.mxu0 }
 0x12d   : > { %v818_v27 = vmul.f32 %v1664_v24, %v745_v23  ;;  %v800_v24 = vpop.permute.xlu0 %799 }
 0x12e   : > { %v1666_v29 = vpop.f32.mrf.mxu0 }
 0x12f   : > { %v833_v30 = vpack.c.bf16 %v818_v27, %v817_v26  ;;  %v1667_v32 = vadd.f32 %v1666_v29, %v1665_v25  ;;  %v805_v26 = vpop.permute.xlu1 %804 }
 0x130   : > { %v1668_v31 = vpop.f32.mrf.mxu0 }
 0x131   : > { %1787 = vmatprep.mubr.bf16.mxu1 %v833_v30  ;;  %v819_v37 = vmul.f32 %v1667_v32, %v750_v28 }
 0x132   : > { %v1669_v33 = vpop.f32.mrf.mxu0 }
 0x133   : > { %v1670_v34 = vadd.f32 %v1669_v33, %v1668_v31 }
 0x134   : > { %v1671_v36 = vpop.f32.mrf.mxu0 }
 0x135   : > { %v820_v38 = vmul.f32 %v1670_v34, %v755_v35 }
 0x136   : > { %v1672_v39 = vpop.f32.mrf.mxu0 }
 0x137   : > { %v834_v40 = vpack.c.bf16 %v820_v38, %v819_v37  ;;  %v1673_v42 = vadd.f32 %v1672_v39, %v1671_v36  ;;  %v810_v36 = vpop.permute.xlu0 %809  ;;  %v815_v37 = vpop.permute.xlu1 %814 }
 0x138   : > { %v1674_v41 = vpop.f32.mrf.mxu0 }
 0x139   : > { %1788 = vmatmul.mubr.bf16.vlgmr.msra.gmra.mxu1 %v834_v40  ;;  %v821_v48 = vmul.f32 %v1673_v42, %v760_v44 }
 0x13a   : > { %v1675_v43 = vpop.f32.mrf.mxu0 }
 0x13b   : > { %v1676_v45 = vadd.f32 %v1675_v43, %v1674_v41  ;;  %v1757_v41 = vpop.f32.mrf.mxu1 }
 0x13c   : > { %v1677_v47 = vpop.f32.mrf.mxu0 }
 0x13d   : > { %v822_v49 = vmul.f32 %v1676_v45, %v765_v46  ;;  %v1020_v42 = vpop.f32.mrf.mxu1 }
 0x13e   : > { %v1678_v50 = vpop.f32.mrf.mxu0 }
 0x13f   : > { %v835_v51 = vpack.c.bf16 %v822_v49, %v821_v48  ;;  %v1679_v53 = vadd.f32 %v1678_v50, %v1677_v47  ;;  %v1758_v43 = vpop.f32.mrf.mxu1 }
 0x140   : > { %v1680_v52 = vpop.f32.mrf.mxu0 }
 0x141   : > { %1791 = vmatprep.mubr.bf16.mxu1 %v835_v51  ;;  %v823_v59 = vmul.f32 %v1679_v53, %v770_v55  ;;  %v1023_v44 = vpop.f32.mrf.mxu1 }
 0x142   : > { %v1681_v54 = vpop.f32.mrf.mxu0 }
 0x143   : > { %v1682_v56 = vadd.f32 %v1681_v54, %v1680_v52  ;;  %v1761_v45 = vpop.f32.mrf.mxu1 }
 0x144   : > { %v1683_v58 = vpop.f32.mrf.mxu0 }
 0x145   : > { %v824_v60 = vmul.f32 %v1682_v56, %v775_v57  ;;  %v1036_v46 = vpop.f32.mrf.mxu1 }
 0x146   : > { %v1684_v61 = vpop.f32.mrf.mxu0 }
 0x147   : > { %v836_v62 = vpack.c.bf16 %v824_v60, %v823_v59  ;;  %v1685_v0 = vadd.f32 %v1684_v61, %v1683_v58  ;;  %v1762_v47 = vpop.f32.mrf.mxu1  ;;  %v2346_v59 = vld [vmem:[%s2440_s5] ss:$0 sm:$0xff] }
 0x148   : > { %v1686_v63 = vpop.f32.mrf.mxu0 }
 0x149   : > { %1792 = vmatmul.mubr.bf16.gmra.mxu1 %v836_v62  ;;  %v825_v6 = vmul.f32 %v1685_v0, %v780_v2  ;;  %v1039_v48 = vpop.f32.mrf.mxu1 }
 0x14a   : > { %v1687_v1 = vpop.f32.mrf.mxu0 }
 0x14b   : > { %v1688_v3 = vadd.f32 %v1687_v1, %v1686_v63  ;;  %v1765_v49 = vpop.f32.mrf.mxu1 }
 0x14c   : > { %v1689_v5 = vpop.f32.mrf.mxu0 }
 0x14d   : > { %v826_v7 = vmul.f32 %v1688_v3, %v785_v4  ;;  %v1052_v50 = vpop.f32.mrf.mxu1 }
 0x14e   : > { %v1690_v8 = vpop.f32.mrf.mxu0 }
 0x14f   : > { %v837_v9 = vpack.c.bf16 %v826_v7, %v825_v6  ;;  %v1691_v11 = vadd.f32 %v1690_v8, %v1689_v5  ;;  %v1766_v51 = vpop.f32.mrf.mxu1 }
 0x150   : > { %v1692_v10 = vpop.f32.mrf.mxu0 }
 0x151   : > { %1795 = vmatprep.mubr.bf16.mxu1 %v837_v9  ;;  %v827_v17 = vmul.f32 %v1691_v11, %v790_v13  ;;  %v1055_v52 = vpop.f32.mrf.mxu1 }
 0x152   : > { %v1693_v12 = vpop.f32.mrf.mxu0 }
 0x153   : > { %v1694_v14 = vadd.f32 %v1693_v12, %v1692_v10  ;;  %v2335_v53 = vpop.f32.mrf.mxu1 }
 0x154   : > { %v1695_v16 = vpop.f32.mrf.mxu0 }
 0x155   : > { %v828_v18 = vmul.f32 %v1694_v14, %v795_v15  ;;  %v2337_v54 = vpop.f32.mrf.mxu1 }
 0x156   : > { %v1696_v19 = vpop.f32.mrf.mxu0 }
 0x157   : > { %v838_v20 = vpack.c.bf16 %v828_v18, %v827_v17  ;;  %v1697_v22 = vadd.f32 %v1696_v19, %v1695_v16  ;;  %v2339_v55 = vpop.f32.mrf.mxu1 }
 0x158   : > { %v1698_v21 = vpop.f32.mrf.mxu0 }
 0x159   : > { %1796 = vmatmul.mubr.bf16.gmra.mxu1 %v838_v20  ;;  %v829_v28 = vmul.f32 %v1697_v22, %v800_v24  ;;  %v2341_v56 = vpop.f32.mrf.mxu1 }
 0x15a   : > { %v1699_v23 = vpop.f32.mrf.mxu0 }
 0x15b   : > { %v1700_v25 = vadd.f32 %v1699_v23, %v1698_v21 }
 0x15c   : > { %v1701_v27 = vpop.f32.mrf.mxu0 }
 0x15d   : > { %v830_v29 = vmul.f32 %v1700_v25, %v805_v26 }
 0x15e   : > { %v1702_v30 = vpop.f32.mrf.mxu0 }
 0x15f   : > { %v839_v31 = vpack.c.bf16 %v830_v29, %v829_v28  ;;  %v1703_v33 = vadd.f32 %v1702_v30, %v1701_v27 }
 0x160   : > { %v1704_v32 = vpop.f32.mrf.mxu0 }
 0x161   : > { %1799 = vmatprep.mubr.bf16.mxu1 %v839_v31  ;;  %v831_v38 = vmul.f32 %v1703_v33, %v810_v36 }
 0x162   : > { %v1705_v34 = vpop.f32.mrf.mxu0 }
 0x163   : > { %v1706_v35 = vadd.f32 %v1705_v34, %v1704_v32 }
 0x165   : > { %v832_v39 = vmul.f32 %v1706_v35, %v815_v37 }
 0x167   : > { %v840_v40 = vpack.c.bf16 %v832_v39, %v831_v38 }
 0x169   : > { %1800 = vmatmul.mubr.bf16.gmra.mxu1 %v840_v40 }
 0x1f9   : > { %v1789_v57 = vpop.f32.mrf.mxu1 }
 0x1fa   : > { %v1174_v58 = vadd.f32 %v1789_v57, %v1757_v41 }
 0x1fb   : > { %v1165_v60 = vpop.f32.mrf.mxu1 }
 0x1fc   : > { %v1166_v61 = vadd.f32 %v1165_v60, %v1020_v42  ;;  %v1237_v63 = vadd.f32 %v2346_v59, %v1174_v58 }
 0x1fd   : > { %v1790_v62 = vpop.f32.mrf.mxu1 }
 0x1fe   : > { %v1177_v0 = vadd.f32 %v1790_v62, %v1758_v43  ;;  %v1235_v2 = vadd.f32 %v2346_v59, %v1166_v61  ;;  %v1253_v5 = vmax.f32 %v1237_v63, 0.0 }
 0x1ff   : > { %v1168_v1 = vpop.f32.mrf.mxu1 }
 0x200   : > { %v1238_v3 = vadd.f32 %v2346_v59, %v1177_v0  ;;  %v1169_v4 = vadd.f32 %v1168_v1, %v1023_v44  ;;  %v1251_v8 = vmax.f32 %v1235_v2, 0.0 }
 0x202   : > { %v1254_v6 = vmax.f32 %v1238_v3, 0.0  ;;  %v1236_v7 = vadd.f32 %v2346_v59, %v1169_v4 }
 0x204   : > { %v1604_v9 = vpack.c.bf16 %v1254_v6, %v1253_v5  ;;  %v1252_v10 = vmax.f32 %v1236_v7, 0.0 }
 0x206   : > { %1636 = vst [vmem:[%s2354_s18 + $0x8] sm:$0xff] %v1604_v9   ;;  %v1599_v11 = vpack.c.bf16 %v1252_v10, %v1251_v8 }
 0x208   : > { %1600 = vst [vmem:[%s2354_s18] sm:$0xff] %v1599_v11  }
 0x209   : > { %v1793_v12 = vpop.f32.mrf.mxu1 }
 0x20a   : > { %v1190_v13 = vadd.f32 %v1793_v12, %v1761_v45 }
 0x20b   : > { %v1181_v14 = vpop.f32.mrf.mxu1 }
 0x20c   : > { %v1182_v15 = vadd.f32 %v1181_v14, %v1036_v46  ;;  %v1241_v17 = vadd.f32 %v2346_v59, %v1190_v13 }
 0x20d   : > { %v1794_v16 = vpop.f32.mrf.mxu1 }
 0x20e   : > { %v1193_v18 = vadd.f32 %v1794_v16, %v1762_v47  ;;  %v1239_v20 = vadd.f32 %v2346_v59, %v1182_v15  ;;  %v1257_v23 = vmax.f32 %v1241_v17, 0.0 }
 0x20f   : > { %v1184_v19 = vpop.f32.mrf.mxu1 }
 0x210   : > { %v1242_v21 = vadd.f32 %v2346_v59, %v1193_v18  ;;  %v1185_v22 = vadd.f32 %v1184_v19, %v1039_v48  ;;  %v1255_v26 = vmax.f32 %v1239_v20, 0.0 }
 0x212   : > { %v1258_v24 = vmax.f32 %v1242_v21, 0.0  ;;  %v1240_v25 = vadd.f32 %v2346_v59, %v1185_v22 }
 0x214   : > { %v1614_v27 = vpack.c.bf16 %v1258_v24, %v1257_v23  ;;  %v1256_v28 = vmax.f32 %v1240_v25, 0.0 }
 0x216   : > { %1638 = vst [vmem:[%s2354_s18 + $0x18] sm:$0xff] %v1614_v27   ;;  %v1609_v29 = vpack.c.bf16 %v1256_v28, %v1255_v26 }
 0x218   : > { %1637 = vst [vmem:[%s2354_s18 + $0x10] sm:$0xff] %v1609_v29  }
 0x219   : > { %v1797_v30 = vpop.f32.mrf.mxu1 }
 0x21a   : > { %v1206_v31 = vadd.f32 %v1797_v30, %v1765_v49 }
 0x21b   : > { %v1197_v32 = vpop.f32.mrf.mxu1 }
 0x21c   : > { %v1198_v33 = vadd.f32 %v1197_v32, %v1052_v50  ;;  %v1245_v35 = vadd.f32 %v2346_v59, %v1206_v31 }
 0x21d   : > { %v1798_v34 = vpop.f32.mrf.mxu1 }
 0x21e   : > { %v1209_v36 = vadd.f32 %v1798_v34, %v1766_v51  ;;  %v1243_v38 = vadd.f32 %v2346_v59, %v1198_v33  ;;  %v1261_v41 = vmax.f32 %v1245_v35, 0.0 }
 0x21f   : > { %v1200_v37 = vpop.f32.mrf.mxu1 }
 0x220   : > { %v1246_v39 = vadd.f32 %v2346_v59, %v1209_v36  ;;  %v1201_v40 = vadd.f32 %v1200_v37, %v1055_v52  ;;  %v1259_v44 = vmax.f32 %v1243_v38, 0.0 }
 0x222   : > { %v1262_v42 = vmax.f32 %v1246_v39, 0.0  ;;  %v1244_v43 = vadd.f32 %v2346_v59, %v1201_v40 }
 0x224   : > { %v1624_v45 = vpack.c.bf16 %v1262_v42, %v1261_v41  ;;  %v1260_v46 = vmax.f32 %v1244_v43, 0.0 }
 0x226   : > { %1640 = vst [vmem:[%s2354_s18 + $0x28] sm:$0xff] %v1624_v45   ;;  %v1619_v47 = vpack.c.bf16 %v1260_v46, %v1259_v44 }
 0x228   : > { %1639 = vst [vmem:[%s2354_s18 + $0x20] sm:$0xff] %v1619_v47  }
 0x229   : > { %v1801_v48 = vpop.f32.mrf.mxu1 }
 0x22a   : > { %v1222_v49 = vadd.f32 %v1801_v48, %v2335_v53 }
 0x22b   : > { %v1213_v50 = vpop.f32.mrf.mxu1 }
 0x22c   : > { %v1214_v51 = vadd.f32 %v1213_v50, %v2337_v54  ;;  %v1249_v52 = vadd.f32 %v2346_v59, %v1222_v49 }
 0x22d   : > { %v1802_v57 = vpop.f32.mrf.mxu1 }
 0x22e   : > { %v1225_v58 = vadd.f32 %v1802_v57, %v2339_v55  ;;  %v1247_v61 = vadd.f32 %v2346_v59, %v1214_v51  ;;  %v1265_v0 = vmax.f32 %v1249_v52, 0.0 }
 0x22f   : > { %v1216_v60 = vpop.f32.mrf.mxu1 }
 0x230   : > { %v1250_v62 = vadd.f32 %v2346_v59, %v1225_v58  ;;  %v1217_v63 = vadd.f32 %v1216_v60, %v2341_v56  ;;  %v1263_v1 = vmax.f32 %v1247_v61, 0.0 }
 0x232   : > { %v1266_v53 = vmax.f32 %v1250_v62, 0.0  ;;  %v1248_v54 = vadd.f32 %v2346_v59, %v1217_v63 }
 0x234   : > { %v1634_v2 = vpack.c.bf16 %v1266_v53, %v1265_v0  ;;  %v1264_v3 = vmax.f32 %v1248_v54, 0.0 }
 0x236   : > { %1642 = vst [vmem:[%s2354_s18 + $0x38] sm:$0xff] %v1634_v2   ;;  %v1629_v55 = vpack.c.bf16 %v1264_v3, %v1263_v1 }
 0x238   : > { %1641 = vst [vmem:[%s2354_s18 + $0x30] sm:$0xff] %v1629_v55  }
 0x239   : > { %1990 = shalt.err (!%p1987_p4)
}
 0x23a   : > { %s1991_s11 = scalar_lea.hbm %s2383_s28, 1024  ;;  %s1995_s13 = scalar_lea.hbm %s2441_s6, 2048 }
 0x23b   : > { %p1992_p6 = scmp.ne.s32.totalorder %s2383_s28, %s1991_s11  ;;  %p1996_p10 = scmp.lt.s32.totalorder %s2383_s28, %s2441_s6 }
 0x23c   : > { %p1997_p1 = scmp.lt.s32.totalorder %s1995_s13, %s1991_s11 }
 0x23d   : > { %p1993_p9 = pnand %p1992_p6, %p2196_p13 }
 0x23e   : > { %p1998_p8 = por %p1997_p1, %p1996_p10 }
 0x23f   : > { %p1994_p11 = pneg %p1993_p9 }
 0x241   : > { %p1999_p12 = pnand %p1998_p8, %p1994_p11 }
 0x243   : > { %2002 = shalt.err (!%p1999_p12)
}
 0x244   : > { %s2069_s18 = smov 64   ;;  %s2070_s25 = smov 4  }
 0x245   : > { %1809 = dma.vmem_to_hbm [thread:$0]  (%p2196_p13), %s2385_s7, 1024, %s2383_s28, %s1348_s29, %s2069_s18, %s2069_s18, %s2070_s25  }
 0x246 PF: > { %s1376_s30 = sand.u32 1, %s2041_s21   ;;  %p2463_p0 = scmp.ne.s32.totalorder %s2452_s8, 0 }
 0x247   : > { %p2464_p2 = scmp.ge.s32.totalorder %s2061_s26, 2  ;;  %s1377_s15 = scalar_lea.sflag [#allocation5], %s1376_s30 }
 0x249   : > { %p1820_p3 = pnand %p2464_p2, %p2463_p0 }
 0x24b   : > { %p1821_p5 = pneg %p1820_p3 }
 0x24d   : > { %2036 = dma.done.wait (%p1821_p5), %s1377_s15, 1024  }
 0x24e   : > { %2038 = vsyncadd (%p1821_p5), %s1377_s15, 4294966272  ;;  %s23_s26 = sadd.s32 1, %s2061_s26   ;;  %s2465_s24 = sld [smem:[#allocation12_spill]] }
 0x24f   : > { %p20_p7 = scmp.ge.s32.totalorder %s23_s26, 4   ;;  %s2466_s25 = sld [smem:[#allocation13_spill]] }
 0x250   : > { %s2467_s21 = smov %s2045_s22  ;;  %s2468_s22 = smov %s2049_s23 }
 0x251   : > { %s2469_s23 = smov %s2205_s12  ;;  %22 = sbr.rel (!%p20_p7) target bundleno = 9 (0x9), region = 111 }
 0x256   :  { %1382 = vsyncpa [#allocation4], 1 }
 0x257   :  { %1384 = vsyncpa [#allocation4 + $0x1], 1 }
 0x258   :  { %1385 = vsyncpa [#allocation7], 1 }
 0x259   :  { %1386 = vsyncpa [#allocation5], 1 }
 0x25a   :  { %1388 = vsyncpa [#allocation5 + $0x1], 1 }

</bundles_post_ra>
